<compile_context>
chip_gen: v5e
topology: v5e:2x2
jax: 0.10.0
libtpu: 0.0.40
codegen_flags: <defaults>
</compile_context>

<pallas_src>
import functools
import numpy as np
import jax
import jax.numpy as jnp
from jax import lax
from jax.experimental import pallas as pl
from jax.experimental.pallas import tpu as pltpu

_LN_EPS = 1e-6  # pytorchvideo MViT builds all LayerNorms with eps=1e-6.


def _cparams(semantics):
    # Raise the scoped VMEM limit (v5e default is 16 MiB); 32 MiB is safe on
    # v5e / v6e / v7x and far above this model's working sets.
    return pltpu.CompilerParams(dimension_semantics=semantics,
                                vmem_limit_bytes=32 * 1024 * 1024)


# ----------------------------------------------------------------------------
# Pallas kernels
# ----------------------------------------------------------------------------

def _ln_matmul_kernel(x_ref, g_ref, b_ref, w_ref, bias_ref, *o_refs, eps, splits, acts):
    """Fused LayerNorm(x) @ [W1|W2|...] + b, split into one output per Wi."""
    x = x_ref[...]
    mu = jnp.mean(x, axis=-1, keepdims=True)
    d = x - mu
    var = jnp.mean(d * d, axis=-1, keepdims=True)
    xn = d * lax.rsqrt(var + eps) * g_ref[...] + b_ref[...]
    y = jnp.dot(xn.astype(jnp.bfloat16), w_ref[...],
                preferred_element_type=jnp.float32) + bias_ref[...]
    off = 0
    for o_ref, n, act in zip(o_refs, splits, acts):
        z = y[:, off:off + n]
        off += n
        if act == "gelu":
            # TODO(synk): PyTorch nn.GELU uses exact erf; tanh approximation here.
            z = jax.nn.gelu(z, approximate=True)
        o_ref[...] = z


def fused_ln_linear(x2d, g, b, weights, biases, acts, eps=_LN_EPS, bm=512):
    """(M, K) -> LayerNorm -> one concatenated matmul -> tuple of (M, Ni) outputs."""
    M, K = x2d.shape
    splits = tuple(int(w.shape[1]) for w in weights)
    w_cat = jnp.concatenate(weights, axis=1).astype(jnp.bfloat16)
    b_cat = jnp.concatenate(biases).reshape(1, -1).astype(jnp.float32)
    Ntot = int(w_cat.shape[1])
    return pl.pallas_call(
        functools.partial(_ln_matmul_kernel, eps=eps, splits=splits, acts=tuple(acts)),
        out_shape=tuple(jax.ShapeDtypeStruct((M, n), jnp.float32) for n in splits),
        grid=(pl.cdiv(M, bm),),
        in_specs=[pl.BlockSpec((bm, K), lambda i: (i, 0)),
                  pl.BlockSpec((1, K), lambda i: (0, 0)),
                  pl.BlockSpec((1, K), lambda i: (0, 0)),
                  pl.BlockSpec((K, Ntot), lambda i: (0, 0)),
                  pl.BlockSpec((1, Ntot), lambda i: (0, 0))],
        out_specs=tuple(pl.BlockSpec((bm, n), lambda i: (i, 0)) for n in splits),
        compiler_params=_cparams(("parallel",)),
    )(x2d, g.reshape(1, K), b.reshape(1, K), w_cat, b_cat)


def _linear_kernel(x_ref, w_ref, b_ref, o_ref, *, act):
    y = jnp.dot(x_ref[...].astype(jnp.bfloat16), w_ref[...],
                preferred_element_type=jnp.float32) + b_ref[...]
    if act == "gelu":
        y = jax.nn.gelu(y, approximate=True)
    o_ref[...] = y


def pallas_linear(x2d, w, b, act=None, bm=512):
    """(M, K) @ (K, N) + (N,), bf16 operands / f32 accumulation, ragged rows ok."""
    M, K = x2d.shape
    N = int(w.shape[1])
    return pl.pallas_call(
        functools.partial(_linear_kernel, act=act),
        out_shape=jax.ShapeDtypeStruct((M, N), jnp.float32),
        grid=(pl.cdiv(M, bm),),
        in_specs=[pl.BlockSpec((bm, K), lambda i: (i, 0)),
                  pl.BlockSpec((K, N), lambda i: (0, 0)),
                  pl.BlockSpec((1, N), lambda i: (0, 0))],
        out_specs=pl.BlockSpec((bm, N), lambda i: (i, 0)),
        compiler_params=_cparams(("parallel",)),
    )(x2d, w.astype(jnp.bfloat16), b.reshape(1, N))


def _attention_kernel(q_ref, k_ref, v_ref, gq_ref, bq_ref, gk_ref, bk_ref,
                      gv_ref, bv_ref, o_ref, *, heads, hd, scale,
                      norm_q, norm_k, norm_v, eps):
    """Per-batch multi-head attention on lane-dense (N, heads*hd) blocks with the
    per-head post-pool LayerNorms fused in."""
    q = q_ref[0]
    k = k_ref[0]
    v = v_ref[0]

    def group_ln(t, h, g_ref, b_ref):
        ts = t[:, h * hd:(h + 1) * hd]
        mu = jnp.mean(ts, axis=-1, keepdims=True)
        d = ts - mu
        var = jnp.mean(d * d, axis=-1, keepdims=True)
        return d * lax.rsqrt(var + eps) * g_ref[0] + b_ref[0]

    outs = []
    for h in range(heads):
        sl = slice(h * hd, (h + 1) * hd)
        qh = group_ln(q, h, gq_ref, bq_ref) if norm_q else q[:, sl]
        kh = group_ln(k, h, gk_ref, bk_ref) if norm_k else k[:, sl]
        vh = group_ln(v, h, gv_ref, bv_ref) if norm_v else v[:, sl]
        s = lax.dot_general((qh * scale).astype(jnp.bfloat16),
                            kh.astype(jnp.bfloat16),
                            (((1,), (1,)), ((), ())),
                            preferred_element_type=jnp.float32)
        s = s - jnp.max(s, axis=-1, keepdims=True)
        p = jnp.exp(s)
        p = p * pl.reciprocal(jnp.sum(p, axis=-1, keepdims=True), approx=True)
        outs.append(jnp.dot(p.astype(jnp.bfloat16), vh.astype(jnp.bfloat16),
                            preferred_element_type=jnp.float32))
    o_ref[0] = jnp.concatenate(outs, axis=-1)


def pallas_attention(q, k, v, gq, bq, gk, bk, gv, bv, heads, hd, scale,
                     norm_q, norm_k, norm_v):
    """q: (B, Nq, dim), k/v: (B, Nk, dim) -> (B, Nq, dim)."""
    # TODO(synk): full softmax per batch entry is fine at these token counts (<=129);
    # a flash-style (Nq, Nk)-tiled kernel is needed for production MViT sequence lengths.
    B, Nq, dim = q.shape
    Nk = k.shape[1]
    gspec = pl.BlockSpec((1, hd), lambda i: (0, 0))
    return pl.pallas_call(
        functools.partial(_attention_kernel, heads=heads, hd=hd, scale=scale,
                          norm_q=norm_q, norm_k=norm_k, norm_v=norm_v, eps=_LN_EPS),
        out_shape=jax.ShapeDtypeStruct((B, Nq, dim), jnp.float32),
        grid=(B,),
        in_specs=[pl.BlockSpec((1, Nq, dim), lambda i: (i, 0, 0)),
                  pl.BlockSpec((1, Nk, dim), lambda i: (i, 0, 0)),
                  pl.BlockSpec((1, Nk, dim), lambda i: (i, 0, 0)),
                  gspec, gspec, gspec, gspec, gspec, gspec],
        out_specs=pl.BlockSpec((1, Nq, dim), lambda i: (i, 0, 0)),
        compiler_params=_cparams(("parallel",)),
    )(q, k, v, gq, bq, gk, bk, gv, bv)


def _mask_mix_pos_kernel(x_ref, m_ref, tok_ref, pos_ref, o_ref):
    x = x_ref[0]          # (L, D)
    m = m_ref[0]          # (L, 1)
    o_ref[0] = x + (tok_ref[0] - x) * m + pos_ref[0]


def pallas_mask_mix_pos(x, mask_w, mask_token, pos):
    """tokens <- tokens*(1-m) + mask_token*m + pos  (mask mix fused with pos-embed add)."""
    B, L, D = x.shape
    return pl.pallas_call(
        _mask_mix_pos_kernel,
        out_shape=jax.ShapeDtypeStruct((B, L, D), jnp.float32),
        grid=(B,),
        in_specs=[pl.BlockSpec((1, L, D), lambda b: (b, 0, 0)),
                  pl.BlockSpec((1, L, 1), lambda b: (b, 0, 0)),
                  pl.BlockSpec((1, 1, D), lambda b: (0, 0, 0)),
                  pl.BlockSpec((1, L, D), lambda b: (0, 0, 0))],
        out_specs=pl.BlockSpec((1, L, D), lambda b: (b, 0, 0)),
        compiler_params=_cparams(("parallel",)),
    )(x, mask_w, mask_token, pos)


def _masked_mse_kernel(x_ref, t_ref, m_ref, num_ref, den_ref, *, n_rows, bm):
    i = pl.program_id(0)

    @pl.when(i == 0)
    def _():
        num_ref[...] = jnp.zeros_like(num_ref)
        den_ref[...] = jnp.zeros_like(den_ref)

    row = i * bm + lax.broadcasted_iota(jnp.int32, (bm, 1), 0)
    valid = row < n_rows
    d = x_ref[...] - t_ref[...]
    mse = jnp.mean(d * d, axis=-1, keepdims=True)     # (bm, 1)
    mse = jnp.where(valid, mse, 0.0)
    mw = jnp.where(valid, m_ref[...], 0.0)
    num_ref[...] = num_ref[...] + jnp.sum(mse * mw)
    den_ref[...] = den_ref[...] + jnp.sum(mw)


def pallas_masked_mse(x2d, t2d, m2d, bm=512):
    """Tiled sequential reduction: sum(mean((x-t)^2, -1) * mask), sum(mask)."""
    # TODO(synk): at production sizes the tiny last dim (Dc) should be repacked
    # into a lane-dense layout; kept as-is for this toy feature width.
    M, Dc = x2d.shape
    num, den = pl.pallas_call(
        functools.partial(_masked_mse_kernel, n_rows=M, bm=bm),
        out_shape=(jax.ShapeDtypeStruct((1, 1), jnp.float32),
                   jax.ShapeDtypeStruct((1, 1), jnp.float32)),
        grid=(pl.cdiv(M, bm),),
        in_specs=[pl.BlockSpec((bm, Dc), lambda i: (i, 0)),
                  pl.BlockSpec((bm, Dc), lambda i: (i, 0)),
                  pl.BlockSpec((bm, 1), lambda i: (i, 0))],
        out_specs=(pl.BlockSpec((1, 1), lambda i: (0, 0)),
                   pl.BlockSpec((1, 1), lambda i: (0, 0))),
        compiler_params=_cparams(("arbitrary",)),
    )(x2d, t2d, m2d)
    return num[0, 0], den[0, 0]


# ----------------------------------------------------------------------------
# Glue (patch embed, pooling ops)
# ----------------------------------------------------------------------------

def conv3d_patch_embed(x, w, b, stride, padding):
    """x: (B, C, T, H, W); w: (D, C, kT, kH, kW) -> tokens (B, L, D), thw."""
    # TODO(synk): patch-embed Conv3d kept in lax (XLA conv); a Pallas window-DMA
    # conv kernel would remove the extra NCDHW->token transpose pass.
    y = lax.conv_general_dilated(
        x, w, window_strides=tuple(stride),
        padding=[(p, p) for p in padding],
        dimension_numbers=("NCDHW", "OIDHW", "NCDHW"))
    y = y + b.reshape(1, -1, 1, 1, 1)
    B, D, To, Ho, Wo = y.shape
    tokens = y.reshape(B, D, To * Ho * Wo).transpose(0, 2, 1)
    return tokens, (To, Ho, Wo)


def pool_tokens(tokens, thw, conv_w, stride, heads):
    """Depthwise 3x3x3 conv pooling on the token grid (cls passes through).
    conv_w: (head_dim, 1, 3, 3, 3) shared across heads (pytorchvideo depthwise pool)."""
    # TODO(synk): tiny depthwise pooling conv kept in lax (negligible compute).
    B, N, dim = tokens.shape
    T, H, W = thw
    cls_tok, tok = tokens[:, :1, :], tokens[:, 1:, :]
    xg = tok.reshape(B, T, H, W, dim).transpose(0, 4, 1, 2, 3)      # (B, dim, T, H, W)
    w_full = jnp.tile(conv_w, (heads, 1, 1, 1, 1))                  # (dim, 1, 3, 3, 3)
    y = lax.conv_general_dilated(
        xg, w_full, window_strides=tuple(stride),
        padding=[(1, 1), (1, 1), (1, 1)],
        dimension_numbers=("NCDHW", "OIDHW", "NCDHW"),
        feature_group_count=dim)
    To, Ho, Wo = y.shape[2], y.shape[3], y.shape[4]
    y = y.reshape(B, dim, To * Ho * Wo).transpose(0, 2, 1)
    return jnp.concatenate([cls_tok, y], axis=1), (To, Ho, Wo)


def maxpool_skip(x, thw, stride_q):
    """MaxPool3d residual pool on the token grid; cls token passes through."""
    B, N, C = x.shape
    T, H, W = thw
    ks = tuple(s + 1 if s > 1 else s for s in stride_q)
    pad = tuple(k // 2 for k in ks)
    cls_tok, tok = x[:, :1, :], x[:, 1:, :]
    g = tok.reshape(B, T, H, W, C)
    y = lax.reduce_window(
        g, -jnp.inf, lax.max,
        window_dimensions=(1,) + ks + (1,),
        window_strides=(1,) + tuple(stride_q) + (1,),
        padding=((0, 0),) + tuple((p, p) for p in pad) + ((0, 0),))
    To, Ho, Wo = y.shape[1], y.shape[2], y.shape[3]
    return jnp.concatenate([cls_tok, y.reshape(B, To * Ho * Wo, C)], axis=1)


# ----------------------------------------------------------------------------
# MViT block / MaskFeat forward (pytorchvideo MultiScaleBlock semantics)
# ----------------------------------------------------------------------------

def multiscale_block(x, thw, p):
    B, N, dim = x.shape
    heads = p["num_heads"]
    hd = dim // heads
    scale = hd ** -0.5
    dim_out = p["dim_out"]
    has_q_pool = p["pool_q_w"] is not None

    # fused LayerNorm1 + q/k/v projections (one concatenated matmul)
    q2, k2, v2 = fused_ln_linear(
        x.reshape(B * N, dim), p["ln1_g"], p["ln1_b"],
        [p["wq"], p["wk"], p["wv"]], [p["bq"], p["bk"], p["bv"]],
        [None, None, None])
    q = q2.reshape(B, N, dim)
    k = k2.reshape(B, N, dim)
    v = v2.reshape(B, N, dim)

    if has_q_pool:
        q, thw_q = pool_tokens(q, thw, p["pool_q_w"], p["stride_q"], heads)
    else:
        thw_q = thw
    k, _ = pool_tokens(k, thw, p["pool_k_w"], p["stride_kv"], heads)
    v, _ = pool_tokens(v, thw, p["pool_v_w"], p["stride_kv"], heads)

    ones = jnp.ones((1, hd), jnp.float32)
    zeros = jnp.zeros((1, hd), jnp.float32)
    gq = p["nq_g"].reshape(1, hd) if has_q_pool else ones
    bq = p["nq_b"].reshape(1, hd) if has_q_pool else zeros

    # attention with the per-head post-pool LayerNorms fused in
    o = pallas_attention(q, k, v, gq, bq,
                         p["nk_g"].reshape(1, hd), p["nk_b"].reshape(1, hd),
                         p["nv_g"].reshape(1, hd), p["nv_b"].reshape(1, hd),
                         heads, hd, scale,
                         norm_q=has_q_pool, norm_k=True, norm_v=True)
    Nq = o.shape[1]
    attn_out = pallas_linear(o.reshape(B * Nq, dim),
                             p["wproj"], p["bproj"]).reshape(B, Nq, dim)

    x_res = maxpool_skip(x, thw, p["stride_q"]) if has_q_pool else x
    x = x_res + attn_out

    # fused LayerNorm2 + fc1(+GELU) (+ optional block projection)
    x2d = x.reshape(B * Nq, dim)
    if dim != dim_out:
        h1, xproj = fused_ln_linear(
            x2d, p["ln2_g"], p["ln2_b"],
            [p["w_fc1"], p["w_blkproj"]], [p["b_fc1"], p["b_blkproj"]],
            ["gelu", None])
        x_base = xproj.reshape(B, Nq, dim_out)
    else:
        (h1,) = fused_ln_linear(x2d, p["ln2_g"], p["ln2_b"],
                                [p["w_fc1"]], [p["b_fc1"]], ["gelu"])
        x_base = x
    x_mlp = pallas_linear(h1, p["w_fc2"], p["b_fc2"]).reshape(B, Nq, dim_out)
    return x_base + x_mlp, thw_q


def maskfeat_forward(x, target_x, mask, cube_marker, params, cfg):
    B = x.shape[0]
    dsr = cfg["downsample_rate"]
    dt = cfg["stride"][0]
    mp = params["mvit"]

    # patch embed: Conv3d -> flatten(2).transpose(1,2)
    xc = jnp.transpose(x, (0, 2, 1, 3, 4))   # (B, C, T, H, W)
    tokens, thw0 = conv3d_patch_embed(xc, params["conv_w"], params["conv_b"],
                                      cfg["stride"], cfg["conv_padding"])
    _, L, D0 = tokens.shape
    T0, H0, W0 = thw0
    S = H0 * W0

    # fused mask-token mixing + positional-embedding add (Pallas)
    m = mask.astype(jnp.float32)
    dense_mask = jnp.repeat(jnp.repeat(m, dsr, axis=2), dsr, axis=3)
    mask_w = dense_mask.reshape(B, L, 1)
    pos_tok = (jnp.tile(mp["pos_embed_spatial"], (1, T0, 1))
               + jnp.repeat(mp["pos_embed_temporal"], S, axis=1))       # (1, L, D0)
    tokens = pallas_mask_mix_pos(tokens, mask_w, params["mask_token"], pos_tok)

    cls_row = mp["cls_token"] + mp["pos_embed_class"]                   # (1, 1, D0)
    xt = jnp.concatenate([jnp.broadcast_to(cls_row, (B, 1, D0)), tokens], axis=1)

    # MViT blocks
    thw = thw0
    for p in mp["blocks"]:
        xt, thw = multiscale_block(xt, thw, p)

    # fused final LayerNorm + decoder head (Pallas)
    Bn, N, C = xt.shape
    (pred2d,) = fused_ln_linear(xt.reshape(Bn * N, C), mp["norm_g"], mp["norm_b"],
                                [params["dec_w"]], [params["dec_b"]], [None])
    pred = pred2d.reshape(Bn, N, -1)[:, 1:, :]

    # rearrange 'b (t h w) (dt dc) -> b (t dt) h w dc'
    t = cfg["num_frames"] // dt
    h = cfg["img_size"] // (cfg["stride"][1] * dsr)
    w = cfg["img_size"] // (cfg["stride"][2] * dsr)
    dc = pred.shape[-1] // dt
    xr = pred.reshape(B, t, h, w, dt, dc).transpose(0, 1, 4, 2, 3, 5)
    xr = xr.reshape(B, t * dt, h, w, dc)

    # mask: repeat over dt frames, keep only cube-center frames
    mask_f = jnp.repeat(m, dt, axis=1)                                   # (B, T, h, w)
    keep = np.zeros((B, cfg["num_frames"]), dtype=np.float32)
    for i, mark_item in enumerate(cube_marker):
        for (start_frame, span_frame) in mark_item:
            keep[i, start_frame * dt + span_frame * dt // 2] = 1.0
    mask_f = mask_f * jnp.asarray(keep)[:, :, None, None]

    # masked MSE loss (tiled Pallas reduction)
    Mrows = B * cfg["num_frames"] * h * w
    num, den = pallas_masked_mse(xr.reshape(Mrows, dc),
                                 target_x.reshape(Mrows, dc),
                                 mask_f.reshape(Mrows, 1))
    loss = num / (den + 1e-5)
    return xr, loss


# ----------------------------------------------------------------------------
# Deterministic parameter construction (mirrors the MViT builder schedule)
# ----------------------------------------------------------------------------

def round_width(width, multiplier, min_width=1, divisor=1):
    if not multiplier:
        return int(width)
    width *= multiplier
    min_width = min_width or divisor
    return int(max(min_width, int(width + divisor / 2) // divisor * divisor))


def build_params(cfg, seed=0):
    depth = 16
    embed_dim_mul = [[1, 2.0], [3, 2.0], [14, 2.0]]
    atten_head_mul = [[1, 2.0], [3, 2.0], [14, 2.0]]
    pool_q_stride_size = [[1, 1, 2, 2], [3, 1, 2, 2], [14, 1, 2, 2]]
    pool_kv_stride_adaptive = [1, 8, 8]

    keys = iter(jax.random.split(jax.random.PRNGKey(seed), 1024))

    def nrm(shape, std=0.02):
        return std * jax.random.normal(next(keys), shape, dtype=jnp.float32)

    def xavier2d(shape):
        fan_out, fan_in = shape
        bound = float(np.sqrt(6.0 / (fan_in + fan_out)))
        return jax.random.uniform(next(keys), shape, jnp.float32, -bound, bound)

    ped = cfg["patch_embed_dim"]
    C, kT, kH, kW = cfg["input_channels"], *cfg["conv_kernel"]

    conv_w = xavier2d((ped, C * kT * kH * kW)).reshape(ped, C, kT, kH, kW)
    conv_b = jnp.zeros((ped,), jnp.float32)
    mask_token = nrm((1, 1, ped))
    embed_dim = 2 ** len(embed_dim_mul) * ped
    dec_w = xavier2d((cfg["feature_dim"], embed_dim)).T
    dec_b = jnp.zeros((cfg["feature_dim"],), jnp.float32)

    dim_mul = np.ones(depth + 1)
    head_mul = np.ones(depth + 1)
    for i, mul in embed_dim_mul:
        dim_mul[int(i)] = mul
    for i, mul in atten_head_mul:
        head_mul[int(i)] = mul
    stride_q = [[] for _ in range(depth)]
    stride_kv = [[] for _ in range(depth)]
    for e in pool_q_stride_size:
        stride_q[e[0]] = e[1:]
    _skv = list(pool_kv_stride_adaptive)
    for i in range(depth):
        if len(stride_q[i]) > 0:
            _skv = [max(_skv[d] // stride_q[i][d], 1) for d in range(len(_skv))]
        stride_kv[i] = list(_skv)

    blocks = []
    num_heads, dim = 1, ped
    for i in range(depth):
        num_heads = round_width(num_heads, head_mul[i], min_width=1, divisor=1)
        dim = round_width(dim, dim_mul[i], divisor=num_heads)
        dim_out = round_width(dim, dim_mul[i + 1],
                              divisor=round_width(num_heads, head_mul[i + 1]))
        hd = dim // num_heads
        hidden = int(dim * 4.0)
        has_q_pool = len(stride_q[i]) > 0
        p = dict(
            dim=dim, dim_out=dim_out, num_heads=num_heads,
            stride_q=tuple(stride_q[i]) if has_q_pool else None,
            stride_kv=tuple(stride_kv[i]),
            ln1_g=jnp.ones((dim,)), ln1_b=jnp.zeros((dim,)),
            wq=nrm((dim, dim)), bq=jnp.zeros((dim,)),
            wk=nrm((dim, dim)), bk=jnp.zeros((dim,)),
            wv=nrm((dim, dim)), bv=jnp.zeros((dim,)),
            pool_q_w=nrm((hd, 1, 3, 3, 3)) if has_q_pool else None,
            nq_g=jnp.ones((hd,)) if has_q_pool else None,
            nq_b=jnp.zeros((hd,)) if has_q_pool else None,
            pool_k_w=nrm((hd, 1, 3, 3, 3)),
            nk_g=jnp.ones((hd,)), nk_b=jnp.zeros((hd,)),
            pool_v_w=nrm((hd, 1, 3, 3, 3)),
            nv_g=jnp.ones((hd,)), nv_b=jnp.zeros((hd,)),
            wproj=nrm((dim, dim)), bproj=jnp.zeros((dim,)),
            ln2_g=jnp.ones((dim,)), ln2_b=jnp.zeros((dim,)),
            w_fc1=nrm((dim, hidden)), b_fc1=jnp.zeros((hidden,)),
            w_fc2=nrm((hidden, dim_out)), b_fc2=jnp.zeros((dim_out,)),
        )
        if dim != dim_out:
            p["w_blkproj"] = nrm((dim, dim_out))
            p["b_blkproj"] = jnp.zeros((dim_out,))
        blocks.append(p)

    T0 = cfg["num_frames"] // cfg["stride"][0]
    H0 = cfg["img_size"] // cfg["stride"][1]
    W0 = cfg["img_size"] // cfg["stride"][2]
    mvit = dict(
        cls_token=nrm((1, 1, ped)),
        pos_embed_spatial=nrm((1, H0 * W0, ped)),
        pos_embed_temporal=nrm((1, T0, ped)),
        pos_embed_class=nrm((1, 1, ped)),
        norm_g=jnp.ones((embed_dim,)), norm_b=jnp.zeros((embed_dim,)),
        blocks=blocks,
    )
    return dict(conv_w=conv_w, conv_b=conv_b, mask_token=mask_token,
                dec_w=dec_w, dec_b=dec_b, mvit=mvit)


# ----------------------------------------------------------------------------
if __name__ == "__main__":
    cfg = dict(img_size=32, num_frames=4, input_channels=3, feature_dim=10,
               patch_embed_dim=16, conv_kernel=(3, 7, 7), stride=(2, 4, 4),
               conv_padding=(1, 3, 3), downsample_rate=2 ** 3)
    params = build_params(cfg, seed=0)

    key = jax.random.PRNGKey(0)
    kx, kt, km = jax.random.split(key, 3)
    B = 2
    h = cfg["img_size"] // (cfg["stride"][1] * cfg["downsample_rate"])
    w = cfg["img_size"] // (cfg["stride"][2] * cfg["downsample_rate"])
    x = jax.random.normal(kx, (B, cfg["num_frames"], cfg["input_channels"],
                               cfg["img_size"], cfg["img_size"]), jnp.float32)
    target_x = jax.random.normal(
        kt, (B, cfg["num_frames"], h, w, cfg["feature_dim"] // cfg["stride"][0]),
        jnp.float32)
    mask = (jax.random.uniform(
        km, (B, cfg["num_frames"] // cfg["stride"][0], h, w)) > 0.5).astype(jnp.float32)
    cube_marker = [[(0, 2)], [(1, 1)]]   # per-batch (start_frame, span_frame) cubes

    pred, loss = maskfeat_forward(x, target_x, mask, cube_marker, params, cfg)
    jax.block_until_ready(pred)
    jax.block_until_ready(loss)
    assert pred.shape == (B, cfg["num_frames"], h, w, cfg["feature_dim"] // 2)
    print("KERNEL_OK")
</pallas_src>

<mosaic_0001>
module attributes {stable_mosaic.version = 11 : i64} {
  func.func @_mask_mix_pos_kernel(%arg0: i32, %arg1: memref<1x128x16xf32, #tpu.memory_space<vmem>>, %arg2: memref<1x128x1xf32, #tpu.memory_space<vmem>>, %arg3: memref<1x1x16xf32, #tpu.memory_space<vmem>>, %arg4: memref<1x128x16xf32, #tpu.memory_space<vmem>>, %arg5: memref<1x128x16xf32, #tpu.memory_space<vmem>>) attributes {dimension_semantics = [#tpu.dimension_semantics<parallel>], iteration_bounds = array<i64: 2>, scalar_prefetch = 0 : i64, scratch_operands = 0 : i64, tpu.core_type = #tpu.core_type<tc>, window_params = [{transform_indices = @transform_0, window_bounds = array<i64: 1, 128, 16>}, {transform_indices = @transform_1, window_bounds = array<i64: 1, 128, 1>}, {pipeline_mode = #tpu.pipeline_mode<synchronous>, transform_indices = @transform_2, window_bounds = array<i64: 1, 1, 16>}, {pipeline_mode = #tpu.pipeline_mode<synchronous>, transform_indices = @transform_3, window_bounds = array<i64: 1, 128, 16>}, {transform_indices = @transform_4, window_bounds = array<i64: 1, 128, 16>}]} {
    %c0 = arith.constant 0 : index
    %c0_0 = arith.constant 0 : index
    %c0_1 = arith.constant 0 : index
    %0 = vector.load %arg1[%c0, %c0_0, %c0_1] : memref<1x128x16xf32, #tpu.memory_space<vmem>>, vector<1x128x16xf32>
    %1 = vector.shape_cast %0 : vector<1x128x16xf32> to vector<128x16xf32>
    %c0_2 = arith.constant 0 : index
    %c0_3 = arith.constant 0 : index
    %c0_4 = arith.constant 0 : index
    %2 = vector.load %arg2[%c0_2, %c0_3, %c0_4] : memref<1x128x1xf32, #tpu.memory_space<vmem>>, vector<1x128x1xf32>
    %3 = vector.shape_cast %2 : vector<1x128x1xf32> to vector<128x1xf32>
    %c0_5 = arith.constant 0 : index
    %c0_6 = arith.constant 0 : index
    %c0_7 = arith.constant 0 : index
    %4 = vector.load %arg3[%c0_5, %c0_6, %c0_7] : memref<1x1x16xf32, #tpu.memory_space<vmem>>, vector<1x1x16xf32>
    %5 = vector.shape_cast %4 : vector<1x1x16xf32> to vector<1x16xf32>
    %6 = vector.broadcast %5 : vector<1x16xf32> to vector<128x16xf32>
    %7 = arith.subf %6, %1 : vector<128x16xf32>
    %8 = vector.broadcast %3 : vector<128x1xf32> to vector<128x16xf32>
    %9 = arith.mulf %7, %8 : vector<128x16xf32>
    %10 = arith.addf %1, %9 : vector<128x16xf32>
    %c0_8 = arith.constant 0 : index
    %c0_9 = arith.constant 0 : index
    %c0_10 = arith.constant 0 : index
    %11 = vector.load %arg4[%c0_8, %c0_9, %c0_10] : memref<1x128x16xf32, #tpu.memory_space<vmem>>, vector<1x128x16xf32>
    %12 = vector.shape_cast %11 : vector<1x128x16xf32> to vector<128x16xf32>
    %13 = arith.addf %10, %12 : vector<128x16xf32>
    %c0_11 = arith.constant 0 : index
    %c0_12 = arith.constant 0 : index
    %c0_13 = arith.constant 0 : index
    %14 = vector.load %arg5[%c0_11, %c0_12, %c0_13] : memref<1x128x16xf32, #tpu.memory_space<vmem>>, vector<1x128x16xf32>
    %15 = vector.shape_cast %14 : vector<1x128x16xf32> to vector<128x16xf32>
    %16 = vector.shape_cast %13 : vector<128x16xf32> to vector<1x128x16xf32>
    tpu.vector_store %arg5[%c0_11, %c0_12, %c0_13], %16 {strides = array<i32>} : memref<1x128x16xf32, #tpu.memory_space<vmem>>, vector<1x128x16xf32>,
    return
  }
  func.func @transform_0(%arg0: i32) -> (i32, i32, i32) {
    %c0_i32 = arith.constant 0 : i32
    %c0_i32_0 = arith.constant 0 : i32
    %c0_i32_1 = arith.constant 0 : i32
    return %arg0, %c0_i32, %c0_i32_0 : i32, i32, i32
  }
  func.func @transform_1(%arg0: i32) -> (i32, i32, i32) {
    %c0_i32 = arith.constant 0 : i32
    %c0_i32_0 = arith.constant 0 : i32
    %c0_i32_1 = arith.constant 0 : i32
    return %arg0, %c0_i32, %c0_i32_0 : i32, i32, i32
  }
  func.func @transform_2(%arg0: i32) -> (i32, i32, i32) {
    %c0_i32 = arith.constant 0 : i32
    %c0_i32_0 = arith.constant 0 : i32
    %c0_i32_1 = arith.constant 0 : i32
    %c0_i32_2 = arith.constant 0 : i32
    return %c0_i32, %c0_i32_0, %c0_i32_1 : i32, i32, i32
  }
  func.func @transform_3(%arg0: i32) -> (i32, i32, i32) {
    %c0_i32 = arith.constant 0 : i32
    %c0_i32_0 = arith.constant 0 : i32
    %c0_i32_1 = arith.constant 0 : i32
    %c0_i32_2 = arith.constant 0 : i32
    return %c0_i32, %c0_i32_0, %c0_i32_1 : i32, i32, i32
  }
  func.func @transform_4(%arg0: i32) -> (i32, i32, i32) {
    %c0_i32 = arith.constant 0 : i32
    %c0_i32_0 = arith.constant 0 : i32
    %c0_i32_1 = arith.constant 0 : i32
    return %arg0, %c0_i32, %c0_i32_0 : i32, i32, i32
  }
}

</mosaic_0001>

<bundles_post_ra>
// kernel: tpu_custom_call.1
= control target key start
LH: loop header
LB: loop body
LE: loop exit
PB: predicated region body
PF: predicated region fallthrough
CT: control target
= control target key end

     0   :  { %s561_s15 = smov 0   ;;  %s732_s0 = inlined_call_operand.vmem [shape: f32[2,128,16], index: 0, kind: input, shape index: {}]   ;;  %s733_s1 = inlined_call_operand.vmem [shape: f32[2,128,1], index: 1, kind: input, shape index: {}]   ;;  %s734_s2 = inlined_call_operand.vmem [shape: f32[1,1,16], index: 2, kind: input, shape index: {}]   ;;  %s735_s3 = inlined_call_operand.vmem [shape: f32[1,128,16], index: 3, kind: input, shape index: {}]   ;;  %s736_s4 = inlined_call_operand.vmem [shape: f32[2,128,16], index: 4, kind: output, shape index: {}]  }
   0x1 LB: > { %s498_s16 = sadd.s32 4294967295, %s533_s15   ;;  %p502_p0 = scmp.ge.s32.totalorder %s533_s15, 1  ;;  %s533_s15 = sphi %s561_s15, %s14_s15  }
   0x2   : > { %p172_p1 = scmp.lt.s32.totalorder %s533_s15, 3 }
   0x4   : > { %p173_p2 = pnand %p502_p0, %p172_p1 }
   0x5   : > { %p203_p3 = scmp.lt.s32.totalorder (!%p173_p2), %s498_s16, 1 }
   0x6   : > { %176 = sbr.rel (%p173_p2) target bundleno = 178 (0xb2), region = 36 }
   0xb   : > { %v535_v0 = vmov 0   ;;  %s738_s16 = smov (!%p203_p3, %s498_s16), 1  ;;  %v603_v18 = vld [vmem:[%s734_s2] ss:$0 sm:$0xff]  ;;  %vm414_vm0 = vcmask 130048   ;;  %v387_v29 = vld [vmem:[%s735_s3 + $0x28] sm:$0xff] }
   0xc   : > { %525 = vset.pattern.permute.xlu2 %v535_v0  ;;  %524 = vset.pattern.permute.xlu1 %v535_v0  ;;  %s569_s17 = sshll.u32 %s738_s16, 7  ;;  %v386_v22 = vld [vmem:[%s735_s3 + $0x20] sm:$0xff]  ;;  %v393_v47 = vld [vmem:[%s735_s3 + $0x58] sm:$0xff]  ;;  %v384_v51 = vld [vmem:[%s735_s3 + $0x10] sm:$0xff] }
   0xd   : > { %523 = vset.pattern.permute.xlu0 %v535_v0  ;;  %s575_s20 = scalar_lea.vmem %s733_s1, %s569_s17  ;;  %s597_s23 = scalar_lea.vmem %s732_s0, %s569_s17  ;;  %v390_v36 = vld [vmem:[%s735_s3 + $0x40] sm:$0xff] }
   0xe   : > { %v238_v1 = vld [vmem:[%s575_s20 + $0x20] sm:$0xff]  ;;  %v236_v2 = vld [vmem:[%s575_s20 + $0x10] sm:$0xff]  ;;  %v239_v4 = vld [vmem:[%s575_s20 + $0x28] sm:$0xff]  ;;  %s615_s30 = scalar_lea.vmem %s736_s4, %s569_s17 }
   0xf   : > { %v234_v3 = vld [vmem:[%s575_s20] sm:$0xff]  ;;  %292 = vperm.xlu2 %525, %v238_v1   ;;  %282 = vperm.xlu1 %524, %v236_v2   ;;  %v237_v5 = vld [vmem:[%s575_s20 + $0x18] sm:$0xff]  ;;  %v235_v6 = vld [vmem:[%s575_s20 + $0x8] sm:$0xff] }
  0x10   : > { %272 = vperm.xlu0 %523, %v234_v3   ;;  %v242_v7 = vld [vmem:[%s575_s20 + $0x40] sm:$0xff]  ;;  %v241_v8 = vld [vmem:[%s575_s20 + $0x38] sm:$0xff]  ;;  %v240_v9 = vld [vmem:[%s575_s20 + $0x30] sm:$0xff] }
  0x11   : > { %v245_v10 = vld [vmem:[%s575_s20 + $0x58] sm:$0xff]  ;;  %v244_v11 = vld [vmem:[%s575_s20 + $0x50] sm:$0xff]  ;;  %v243_v12 = vld [vmem:[%s575_s20 + $0x48] sm:$0xff] }
  0x12   : > { %v248_v13 = vld [vmem:[%s575_s20 + $0x70] sm:$0xff]  ;;  %v247_v14 = vld [vmem:[%s575_s20 + $0x68] sm:$0xff]  ;;  %v246_v15 = vld [vmem:[%s575_s20 + $0x60] sm:$0xff] }
  0x13   : > { %v249_v16 = vld [vmem:[%s575_s20 + $0x78] sm:$0xff]  ;;  %v222_v17 = vld [vmem:[%s597_s23 + $0x20] sm:$0xff]  ;;  %v223_v23 = vld [vmem:[%s597_s23 + $0x28] sm:$0xff] }
  0x14   : > { %v258_v19 = vsub.f32 %v603_v18, %v222_v17  ;;  %v259_v26 = vsub.f32 %v603_v18, %v223_v23  ;;  %v226_v30 = vld [vmem:[%s597_s23 + $0x40] sm:$0xff]  ;;  %v229_v37 = vld [vmem:[%s597_s23 + $0x58] sm:$0xff]  ;;  %v220_v38 = vld [vmem:[%s597_s23 + $0x10] sm:$0xff] }
  0x15   : > { %v262_v33 = vsub.f32 %v603_v18, %v226_v30  ;;  %v218_v40 = vld [vmem:[%s597_s23] sm:$0xff]  ;;  %v265_v42 = vsub.f32 %v603_v18, %v229_v37  ;;  %v256_v43 = vsub.f32 %v603_v18, %v220_v38  ;;  %v232_v53 = vld [vmem:[%s597_s23 + $0x70] sm:$0xff]  ;;  %v221_v54 = vld [vmem:[%s597_s23 + $0x18] sm:$0xff] }
  0x16   : > { %v254_v44 = vsub.f32 %v603_v18, %v218_v40  ;;  %v382_v57 = vld [vmem:[%s735_s3] sm:$0xff]  ;;  %v219_v58 = vld [vmem:[%s597_s23 + $0x8] sm:$0xff]  ;;  %v268_v62 = vsub.f32 %v603_v18, %v232_v53  ;;  %v257_v63 = vsub.f32 %v603_v18, %v221_v54 }
  0x17   : > { %297 = vperm.xlu2 %525, %v239_v4   ;;  %287 = vperm.xlu1 %524, %v237_v5   ;;  %v255_v1 = vsub.f32 %v603_v18, %v219_v58  ;;  %v657_v4 = vld [vmem:[%s597_s23 + $0x78] sm:$0xff] }
  0x18   : > { %277 = vperm.xlu0 %523, %v235_v6  }
  0x1f   : > { %312 = vperm.xlu2 %525, %v242_v7   ;;  %307 = vperm.xlu1 %524, %v241_v8   ;;  %v269_v8 = vsub.f32 %v603_v18, %v657_v4 }
  0x20   : > { %302 = vperm.xlu0 %523, %v240_v9   ;;  %v396_v9 = vld [vmem:[%s735_s3 + $0x70] sm:$0xff] }
  0x27   : > { %327 = vperm.xlu2 %525, %v245_v10   ;;  %322 = vperm.xlu1 %524, %v244_v11   ;;  %v385_v10 = vld [vmem:[%s735_s3 + $0x18] sm:$0xff] }
  0x28   : > { %317 = vperm.xlu0 %523, %v243_v12   ;;  %v225_v12 = vld [vmem:[%s597_s23 + $0x38] sm:$0xff] }
  0x2f   : > { %342 = vperm.xlu2 %525, %v248_v13   ;;  %337 = vperm.xlu1 %524, %v247_v14  }
  0x30   : > { %332 = vperm.xlu0 %523, %v246_v15   ;;  %v383_v15 = vld [vmem:[%s735_s3 + $0x8] sm:$0xff] }
  0x38   : > { %347 = vperm.xlu0 %523, %v249_v16   ;;  %v224_v16 = vld [vmem:[%s597_s23 + $0x30] sm:$0xff] }
  0x69   : > { %v293_v20 = vpop.permute.xlu2 %292 }
  0x6a   : > { %v354_v21 = vmul.f32 %v293_v20, %v258_v19 }
  0x6c   : > { %v370_v24 = vadd.f32 %v354_v21, %v222_v17  ;;  %v261_v21 = vsub.f32 %v603_v18, %v225_v12 }
  0x6e   : > { %v402_v25 = vadd.f32 %v386_v22, %v370_v24 }
  0x70   : > { %419 = vst.msk [vmem:[%s615_s30 + $0x20] sm:$0xff] %vm414_vm0, %v402_v25 }
  0x71   : > { %v298_v27 = vpop.permute.xlu2 %297 }
  0x72   : > { %v355_v28 = vmul.f32 %v298_v27, %v259_v26  ;;  %v389_v27 = vld [vmem:[%s735_s3 + $0x38] sm:$0xff] }
  0x74   : > { %v371_v31 = vadd.f32 %v355_v28, %v223_v23  ;;  %v260_v23 = vsub.f32 %v603_v18, %v224_v16 }
  0x76   : > { %v403_v32 = vadd.f32 %v387_v29, %v371_v31  ;;  %v228_v29 = vld [vmem:[%s597_s23 + $0x50] sm:$0xff] }
  0x77   : > { %v388_v31 = vld [vmem:[%s735_s3 + $0x30] sm:$0xff] }
  0x78   : > { %420 = vst.msk [vmem:[%s615_s30 + $0x28] sm:$0xff] %vm414_vm0, %v403_v32  ;;  %v227_v32 = vld [vmem:[%s597_s23 + $0x48] sm:$0xff] }
  0x79   : > { %v313_v34 = vpop.permute.xlu2 %312 }
  0x7a   : > { %v358_v35 = vmul.f32 %v313_v34, %v262_v33 }
  0x7c   : > { %v374_v39 = vadd.f32 %v358_v35, %v226_v30  ;;  %v264_v35 = vsub.f32 %v603_v18, %v228_v29 }
  0x7e   : > { %v406_v41 = vadd.f32 %v390_v36, %v374_v39 }
  0x80   : > { %423 = vst.msk [vmem:[%s615_s30 + $0x40] sm:$0xff] %vm414_vm0, %v406_v41  ;;  %v392_v41 = vld [vmem:[%s735_s3 + $0x50] sm:$0xff] }
  0x81   : > { %v328_v45 = vpop.permute.xlu2 %327  ;;  %v283_v46 = vpop.permute.xlu1 %282 }
  0x82   : > { %v361_v48 = vmul.f32 %v328_v45, %v265_v42  ;;  %v352_v49 = vmul.f32 %v283_v46, %v256_v43  ;;  %v273_v50 = vpop.permute.xlu0 %272  ;;  %v231_v43 = vld [vmem:[%s597_s23 + $0x68] sm:$0xff]  ;;  %v230_v46 = vld [vmem:[%s597_s23 + $0x60] sm:$0xff] }
  0x83   : > { %v350_v52 = vmul.f32 %v273_v50, %v254_v44  ;;  %v391_v45 = vld [vmem:[%s735_s3 + $0x48] sm:$0xff] }
  0x84   : > { %v377_v55 = vadd.f32 %v361_v48, %v229_v37  ;;  %v368_v56 = vadd.f32 %v352_v49, %v220_v38  ;;  %v263_v37 = vsub.f32 %v603_v18, %v227_v32  ;;  %v267_v49 = vsub.f32 %v603_v18, %v231_v43 }
  0x85   : > { %v366_v59 = vadd.f32 %v350_v52, %v218_v40 }
  0x86   : > { %v409_v60 = vadd.f32 %v393_v47, %v377_v55  ;;  %v400_v61 = vadd.f32 %v384_v51, %v368_v56  ;;  %v266_v51 = vsub.f32 %v603_v18, %v230_v46  ;;  %v395_v55 = vld [vmem:[%s735_s3 + $0x68] sm:$0xff] }
  0x87   : > { %v398_v0 = vadd.f32 %v382_v57, %v366_v59 }
  0x88   : > { %426 = vst.msk [vmem:[%s615_s30 + $0x58] sm:$0xff] %vm414_vm0, %v409_v60 }
  0x89   : > { %417 = vst.msk [vmem:[%s615_s30 + $0x10] sm:$0xff] %vm414_vm0, %v400_v61  ;;  %v343_v2 = vpop.permute.xlu2 %342  ;;  %v288_v3 = vpop.permute.xlu1 %287 }
  0x8a   : > { %415 = vst.msk [vmem:[%s615_s30] sm:$0xff] %vm414_vm0, %v398_v0  ;;  %v364_v5 = vmul.f32 %v343_v2, %v268_v62  ;;  %v353_v6 = vmul.f32 %v288_v3, %v257_v63  ;;  %v278_v7 = vpop.permute.xlu0 %277  ;;  %v397_v0 = vld [vmem:[%s735_s3 + $0x78] sm:$0xff] }
  0x8b   : > { %v351_v11 = vmul.f32 %v278_v7, %v255_v1 }
  0x8c   : > { %v380_v13 = vadd.f32 %v364_v5, %v232_v53  ;;  %v369_v14 = vadd.f32 %v353_v6, %v221_v54 }
  0x8d   : > { %v367_v17 = vadd.f32 %v351_v11, %v219_v58  ;;  %v394_v58 = vld [vmem:[%s735_s3 + $0x60] sm:$0xff] }
  0x8e   : > { %v412_v19 = vadd.f32 %v396_v9, %v380_v13  ;;  %v401_v20 = vadd.f32 %v385_v10, %v369_v14 }
  0x8f   : > { %v399_v22 = vadd.f32 %v383_v15, %v367_v17 }
  0x90   : > { %429 = vst.msk [vmem:[%s615_s30 + $0x70] sm:$0xff] %vm414_vm0, %v412_v19 }
  0x91   : > { %418 = vst.msk [vmem:[%s615_s30 + $0x18] sm:$0xff] %vm414_vm0, %v401_v20  ;;  %v308_v24 = vpop.permute.xlu1 %307 }
  0x92   : > { %416 = vst.msk [vmem:[%s615_s30 + $0x8] sm:$0xff] %vm414_vm0, %v399_v22  ;;  %v357_v25 = vmul.f32 %v308_v24, %v261_v21  ;;  %v303_v26 = vpop.permute.xlu0 %302 }
  0x93   : > { %v356_v28 = vmul.f32 %v303_v26, %v260_v23 }
  0x94   : > { %v373_v30 = vadd.f32 %v357_v25, %v225_v12 }
  0x95   : > { %v372_v33 = vadd.f32 %v356_v28, %v224_v16 }
  0x96   : > { %v405_v34 = vadd.f32 %v389_v27, %v373_v30 }
  0x97   : > { %v404_v36 = vadd.f32 %v388_v31, %v372_v33 }
  0x98   : > { %422 = vst.msk [vmem:[%s615_s30 + $0x38] sm:$0xff] %vm414_vm0, %v405_v34 }
  0x99   : > { %421 = vst.msk [vmem:[%s615_s30 + $0x30] sm:$0xff] %vm414_vm0, %v404_v36  ;;  %v323_v38 = vpop.permute.xlu1 %322 }
  0x9a   : > { %v360_v39 = vmul.f32 %v323_v38, %v264_v35  ;;  %v318_v40 = vpop.permute.xlu0 %317 }
  0x9b   : > { %v359_v42 = vmul.f32 %v318_v40, %v263_v37 }
  0x9c   : > { %v376_v44 = vadd.f32 %v360_v39, %v228_v29 }
  0x9d   : > { %v375_v47 = vadd.f32 %v359_v42, %v227_v32 }
  0x9e   : > { %v408_v48 = vadd.f32 %v392_v41, %v376_v44 }
  0x9f   : > { %v407_v50 = vadd.f32 %v391_v45, %v375_v47 }
  0xa0   : > { %425 = vst.msk [vmem:[%s615_s30 + $0x50] sm:$0xff] %vm414_vm0, %v408_v48 }
  0xa1   : > { %424 = vst.msk [vmem:[%s615_s30 + $0x48] sm:$0xff] %vm414_vm0, %v407_v50  ;;  %v338_v52 = vpop.permute.xlu1 %337 }
  0xa2   : > { %v363_v53 = vmul.f32 %v338_v52, %v267_v49  ;;  %v333_v54 = vpop.permute.xlu0 %332 }
  0xa3   : > { %v362_v56 = vmul.f32 %v333_v54, %v266_v51 }
  0xa4   : > { %v379_v57 = vadd.f32 %v363_v53, %v231_v43 }
  0xa5   : > { %v378_v59 = vadd.f32 %v362_v56, %v230_v46 }
  0xa6   : > { %v411_v60 = vadd.f32 %v395_v55, %v379_v57 }
  0xa7   : > { %v410_v61 = vadd.f32 %v394_v58, %v378_v59 }
  0xa8   : > { %428 = vst.msk [vmem:[%s615_s30 + $0x68] sm:$0xff] %vm414_vm0, %v411_v60 }
  0xa9   : > { %427 = vst.msk [vmem:[%s615_s30 + $0x60] sm:$0xff] %vm414_vm0, %v410_v61 }
  0xaa   : > { %v348_v62 = vpop.permute.xlu0 %347 }
  0xab   : > { %v365_v63 = vmul.f32 %v348_v62, %v269_v8 }
  0xad   : > { %v381_v1 = vadd.f32 %v365_v63, %v657_v4 }
  0xaf   : > { %v413_v2 = vadd.f32 %v397_v0, %v381_v1 }
  0xb1   : > { %430 = vst.msk [vmem:[%s615_s30 + $0x78] sm:$0xff] %vm414_vm0, %v413_v2 }
  0xb2 PF: > { %s14_s15 = sadd.s32 1, %s533_s15  }
  0xb3   : > { %p11_p4 = scmp.ge.s32.totalorder %s14_s15, 4  }
  0xb5   :  { %13 = sbr.rel (!%p11_p4) target bundleno = 1 (0x1), region = 69 }

</bundles_post_ra>
